<compile_context>
chip_gen: v7x
topology: tpu7x:2x2x1
jax: 0.10.0
libtpu: 0.0.40
codegen_flags: <defaults>
</compile_context>

<pallas_src>
import jax
import jax.numpy as jnp
from jax.experimental import pallas as pl
from jax.experimental.pallas import tpu as pltpu


def _round_up(x: int, m: int) -> int:
    return (x + m - 1) // m * m


def _cdiv(a: int, b: int) -> int:
    return (a + b - 1) // b


def _sublane_multiple(itemsize: int) -> int:
    # f32 -> 8, bf16 -> 16, int8/fp8 -> 32 (packed sublane tiling).
    return 8 * max(1, 4 // itemsize)


def _log_sigmoid(x):
    """Numerically stable log(sigmoid(x)) = min(x, 0) - log1p(exp(-|x|))."""
    return jnp.minimum(x, 0.0) - jnp.log1p(jnp.exp(-jnp.abs(x)))


def _make_kernel(batch_true: int, block_b: int):
    def kernel(t_ref, c_ref, n_ref, o_ref):
        i = pl.program_id(0)

        t = t_ref[...]                                    # (BB, E)    native dtype
        c = c_ref[...]                                    # (BB, E)
        nz = n_ref[...]                                   # (BB, N, E)

        # Positive term: context . target contracted over E, f32 accumulation.
        pos = jnp.sum(c * t, axis=-1, keepdims=True, dtype=jnp.float32)        # (BB, 1)

        # Negative term: -(noise . target) per noise sample; f32 accumulation
        # without materializing an explicit f32 copy of the (BB, N, E) product.
        neg = jnp.sum(nz * t[:, None, :], axis=-1, dtype=jnp.float32)          # (BB, N)

        per_row = _log_sigmoid(pos) + jnp.sum(
            _log_sigmoid(-neg), axis=-1, keepdims=True)                         # (BB, 1)

        # Mask rows beyond the true batch size: the ragged last block contains
        # unspecified data; the select keeps NaN/Inf out of the partial sum.
        row = i * block_b + jax.lax.broadcasted_iota(jnp.int32, (block_b, 1), 0)
        per_row = jnp.where(row < batch_true, per_row, 0.0)

        block_sum = jnp.sum(per_row, axis=(0, 1), keepdims=True)               # (1, 1)
        # Lane-dense partial-sum output block; wrapper reads element [i, 0, 0].
        o_ref[...] = jnp.zeros(o_ref.shape, jnp.float32) + block_sum

    return kernel


def negative_sampling_loss(target_vector, context_vector, noise_vector, *,
                           block_b=None, vmem_limit_bytes=None):
    """Pallas TPU negative-sampling loss. Returns a scalar f32.

    Inputs may be float32 or bfloat16 (pass bf16 end-to-end to halve HBM
    traffic on this memory-bound kernel; reductions accumulate in f32).
    """
    B, E = target_vector.shape
    Bn, N, En = noise_vector.shape
    assert (Bn, En) == (B, E) and context_vector.shape == (B, E)

    itemsize = jnp.dtype(target_vector.dtype).itemsize

    # Per-generation VMEM budget: query physical VMEM per core and leave
    # double-buffering / compiler headroom (v5e/v6e: 128 MiB, v7x: 64 MiB).
    try:
        vmem_cap = int(pltpu.get_tpu_info().vmem_capacity_bytes)
    except Exception:
        vmem_cap = 64 * 1024 * 1024  # conservative (v7x-safe) fallback
    if vmem_limit_bytes is None:
        vmem_limit_bytes = int(0.72 * vmem_cap)
    else:
        vmem_limit_bytes = min(int(vmem_limit_bytes), int(0.75 * vmem_cap))

    # Bytes resident in VMEM per batch row, including Mosaic's lane padding of
    # E (to 128) and sublane padding of N, plus the native-dtype product temp
    # (and an f32 score copy when inputs are sub-32-bit).
    e_lanes = _round_up(E, 128)
    n_sub = _round_up(N, _sublane_multiple(itemsize))
    stream_bytes = 2 * (2 * e_lanes + n_sub * e_lanes) * itemsize  # dbl-buffered t, c, noise
    temp_bytes = n_sub * e_lanes * itemsize
    if itemsize < 4:
        temp_bytes += n_sub * e_lanes * 4
    bytes_per_row = stream_bytes + temp_bytes

    budget = int(0.85 * vmem_limit_bytes)
    if block_b is None:
        block_b = max(8, (budget // bytes_per_row) // 8 * 8)
        block_b = min(block_b, 4096)
    block_b = max(8, _round_up(int(block_b), 8))
    block_b = min(block_b, _round_up(B, 8))

    num_blocks = _cdiv(B, block_b)

    out = pl.pallas_call(
        _make_kernel(B, block_b),
        out_shape=jax.ShapeDtypeStruct((num_blocks, 8, 128), jnp.float32),
        grid=(num_blocks,),
        in_specs=[
            pl.BlockSpec((block_b, E), lambda i: (i, 0)),
            pl.BlockSpec((block_b, E), lambda i: (i, 0)),
            pl.BlockSpec((block_b, N, E), lambda i: (i, 0, 0)),
        ],
        out_specs=pl.BlockSpec((1, 8, 128), lambda i: (i, 0, 0)),
        compiler_params=pltpu.CompilerParams(
            # Each grid step writes its own output block -> safe to shard the
            # batch axis across TensorCores (helps on v7x; harmless elsewhere).
            dimension_semantics=("parallel",),
            vmem_limit_bytes=vmem_limit_bytes,
        ),
    )(target_vector, context_vector, noise_vector)

    partial_sums = out[:, 0, 0]                   # (num_blocks,)
    return -jnp.sum(partial_sums) / B


def _reference_loss(target, context, noise):
    """Pure-JAX reference mirroring the PyTorch forward exactly."""
    pos = jnp.einsum("be,be->b", context, target)
    out_loss = jnp.log(jax.nn.sigmoid(pos))
    neg = jnp.einsum("bne,be->bn", -noise, target)
    noise_loss = jnp.sum(jnp.log(jax.nn.sigmoid(neg)), axis=1)
    return -jnp.mean(out_loss + noise_loss)


if __name__ == "__main__":
    # Case 1: small shapes consistent with the module (B=2, N=5, E=32).
    # B < block_b and E not a multiple of 128 -> exercises the un-padded,
    # single-partial-block path with in-kernel masking.
    B, N, E = 2, 5, 32
    k_t, k_c, k_n = jax.random.split(jax.random.PRNGKey(0), 3)
    target = jax.random.normal(k_t, (B, E), dtype=jnp.float32) * 0.1
    context = jax.random.normal(k_c, (B, E), dtype=jnp.float32) * 0.1
    noise = jax.random.normal(k_n, (B, N, E), dtype=jnp.float32) * 0.1

    loss = jax.block_until_ready(negative_sampling_loss(target, context, noise))
    ref = _reference_loss(target, context, noise)
    assert jnp.allclose(loss, ref, rtol=1e-5, atol=1e-5), (loss, ref)

    # Case 2: batch not divisible by the block size -> exercises the multi-step
    # parallel grid, per-block partial sums, and the ragged-last-block mask.
    B2, N2, E2 = 20, 5, 32
    k_t2, k_c2, k_n2 = jax.random.split(jax.random.PRNGKey(1), 3)
    target2 = jax.random.normal(k_t2, (B2, E2), dtype=jnp.float32) * 0.1
    context2 = jax.random.normal(k_c2, (B2, E2), dtype=jnp.float32) * 0.1
    noise2 = jax.random.normal(k_n2, (B2, N2, E2), dtype=jnp.float32) * 0.1

    loss2 = jax.block_until_ready(
        negative_sampling_loss(target2, context2, noise2, block_b=8))
    ref2 = _reference_loss(target2, context2, noise2)
    assert jnp.allclose(loss2, ref2, rtol=1e-5, atol=1e-5), (loss2, ref2)

    print("KERNEL_OK")
</pallas_src>

<mosaic_0001>
module attributes {stable_mosaic.version = 11 : i64} {
  func.func @kernel(%arg0: i32, %arg1: memref<8x32xf32, #tpu.memory_space<vmem>>, %arg2: memref<8x32xf32, #tpu.memory_space<vmem>>, %arg3: memref<8x5x32xf32, #tpu.memory_space<vmem>>, %arg4: memref<1x8x128xf32, #tpu.memory_space<vmem>>) attributes {dimension_semantics = [#tpu.dimension_semantics<parallel>], iteration_bounds = array<i64: 1>, scalar_prefetch = 0 : i64, scratch_operands = 0 : i64, tpu.core_type = #tpu.core_type<tc>, window_params = [{transform_indices = @transform_0, window_bounds = array<i64: 8, 32>}, {transform_indices = @transform_1, window_bounds = array<i64: 8, 32>}, {transform_indices = @transform_2, window_bounds = array<i64: 8, 5, 32>}, {transform_indices = @transform_3, window_bounds = array<i64: 1, 8, 128>}]} {
    %c0 = arith.constant 0 : index
    %c0_0 = arith.constant 0 : index
    %0 = vector.load %arg1[%c0, %c0_0] : memref<8x32xf32, #tpu.memory_space<vmem>>, vector<8x32xf32>
    %c0_1 = arith.constant 0 : index
    %c0_2 = arith.constant 0 : index
    %1 = vector.load %arg2[%c0_1, %c0_2] : memref<8x32xf32, #tpu.memory_space<vmem>>, vector<8x32xf32>
    %c0_3 = arith.constant 0 : index
    %c0_4 = arith.constant 0 : index
    %c0_5 = arith.constant 0 : index
    %2 = vector.load %arg3[%c0_3, %c0_4, %c0_5] : memref<8x5x32xf32, #tpu.memory_space<vmem>>, vector<8x5x32xf32>
    %3 = arith.mulf %1, %0 : vector<8x32xf32>
    %cst = arith.constant dense<0.000000e+00> : vector<8xf32>
    %4 = vector.multi_reduction <add>, %3, %cst [1] : vector<8x32xf32> to vector<8xf32>
    %5 = vector.shape_cast %4 : vector<8xf32> to vector<8x1xf32>
    %6 = vector.shape_cast %0 : vector<8x32xf32> to vector<8x1x32xf32>
    %7 = vector.broadcast %6 : vector<8x1x32xf32> to vector<8x5x32xf32>
    %8 = arith.mulf %2, %7 : vector<8x5x32xf32>
    %cst_6 = arith.constant dense<0.000000e+00> : vector<8x5xf32>
    %9 = vector.multi_reduction <add>, %8, %cst_6 [2] : vector<8x5x32xf32> to vector<8x5xf32>
    %cst_7 = arith.constant 0.000000e+00 : f32
    %10 = vector.broadcast %cst_7 : f32 to vector<8x1xf32>
    %11 = arith.minimumf %5, %10 : vector<8x1xf32>
    %12 = math.absf %5 : vector<8x1xf32>
    %cst_8 = arith.constant 0.000000e+00 : f32
    %13 = vector.broadcast %cst_8 : f32 to vector<8x1xf32>
    %14 = arith.subf %13, %12 : vector<8x1xf32>
    %15 = math.exp %14 : vector<8x1xf32>
    %16 = math.log1p %15 : vector<8x1xf32>
    %17 = arith.subf %11, %16 : vector<8x1xf32>
    %cst_9 = arith.constant 0.000000e+00 : f32
    %18 = vector.broadcast %cst_9 : f32 to vector<8x5xf32>
    %19 = arith.subf %18, %9 : vector<8x5xf32>
    %cst_10 = arith.constant 0.000000e+00 : f32
    %20 = vector.broadcast %cst_10 : f32 to vector<8x5xf32>
    %21 = arith.minimumf %19, %20 : vector<8x5xf32>
    %22 = math.absf %19 : vector<8x5xf32>
    %cst_11 = arith.constant 0.000000e+00 : f32
    %23 = vector.broadcast %cst_11 : f32 to vector<8x5xf32>
    %24 = arith.subf %23, %22 : vector<8x5xf32>
    %25 = math.exp %24 : vector<8x5xf32>
    %26 = math.log1p %25 : vector<8x5xf32>
    %27 = arith.subf %21, %26 : vector<8x5xf32>
    %cst_12 = arith.constant dense<0.000000e+00> : vector<8xf32>
    %28 = vector.multi_reduction <add>, %27, %cst_12 [1] : vector<8x5xf32> to vector<8xf32>
    %29 = vector.shape_cast %28 : vector<8xf32> to vector<8x1xf32>
    %30 = arith.addf %17, %29 : vector<8x1xf32>
    %c8_i32 = arith.constant 8 : i32
    %31 = arith.muli %arg0, %c8_i32 : i32
    %32 = tpu.iota {dimensions = array<i32: 0>} : vector<8x1xi32>
    %33 = vector.broadcast %31 : i32 to vector<8x1xi32>
    %34 = arith.addi %33, %32 : vector<8x1xi32>
    %c2_i32 = arith.constant 2 : i32
    %35 = vector.broadcast %c2_i32 : i32 to vector<8x1xi32>
    %36 = arith.cmpi slt, %34, %35 : vector<8x1xi32>
    %cst_13 = arith.constant 0.000000e+00 : f32
    %37 = vector.broadcast %cst_13 : f32 to vector<8x1xf32>
    %38 = arith.select %36, %30, %37 : vector<8x1xi1>, vector<8x1xf32>
    %39 = vector.shape_cast %38 : vector<8x1xf32> to vector<1x8x1xf32>
    %cst_14 = arith.constant dense<0.000000e+00> : vector<1xf32>
    %40 = vector.multi_reduction <add>, %39, %cst_14 [1, 2] : vector<1x8x1xf32> to vector<1xf32>
    %41 = vector.shape_cast %40 : vector<1xf32> to vector<1x1x1xf32>
    %42 = vector.extract %41[0, 0, 0] : f32 from vector<1x1x1xf32>
    %43 = vector.broadcast %42 : f32 to vector<1x1xf32>
    %cst_15 = arith.constant 0.000000e+00 : f32
    %44 = vector.broadcast %cst_15 : f32 to vector<1x8x128xf32>
    %45 = vector.shape_cast %43 : vector<1x1xf32> to vector<1x1x1xf32>
    %46 = vector.broadcast %45 : vector<1x1x1xf32> to vector<1x8x128xf32>
    %47 = arith.addf %44, %46 : vector<1x8x128xf32>
    %c0_16 = arith.constant 0 : index
    %c0_17 = arith.constant 0 : index
    %c0_18 = arith.constant 0 : index
    %48 = vector.load %arg4[%c0_16, %c0_17, %c0_18] : memref<1x8x128xf32, #tpu.memory_space<vmem>>, vector<1x8x128xf32>
    tpu.vector_store %arg4[%c0_16, %c0_17, %c0_18], %47 {strides = array<i32>} : memref<1x8x128xf32, #tpu.memory_space<vmem>>, vector<1x8x128xf32>,
    return
  }
  func.func @transform_0(%arg0: i32) -> (i32, i32) {
    %c0_i32 = arith.constant 0 : i32
    %c0_i32_0 = arith.constant 0 : i32
    return %arg0, %c0_i32 : i32, i32
  }
  func.func @transform_1(%arg0: i32) -> (i32, i32) {
    %c0_i32 = arith.constant 0 : i32
    %c0_i32_0 = arith.constant 0 : i32
    return %arg0, %c0_i32 : i32, i32
  }
  func.func @transform_2(%arg0: i32) -> (i32, i32, i32) {
    %c0_i32 = arith.constant 0 : i32
    %c0_i32_0 = arith.constant 0 : i32
    %c0_i32_1 = arith.constant 0 : i32
    return %arg0, %c0_i32, %c0_i32_0 : i32, i32, i32
  }
  func.func @transform_3(%arg0: i32) -> (i32, i32, i32) {
    %c0_i32 = arith.constant 0 : i32
    %c0_i32_0 = arith.constant 0 : i32
    %c0_i32_1 = arith.constant 0 : i32
    return %arg0, %c0_i32, %c0_i32_0 : i32, i32, i32
  }
}

</mosaic_0001>

<bundles_post_ra>
// kernel: tpu_custom_call.1
= control target key start
LH: loop header
LB: loop body
LE: loop exit
PB: predicated region body
PF: predicated region fallthrough
CT: control target
= control target key end

     0   :  { %v35_v0 = vlaneseq  ;;  %v458_v1 = vmov 1966171168   ;;  %s674_s0 = inlined_call_operand.vmem [shape: f32[2,32], index: 0, kind: input, shape index: {}]   ;;  %s675_s1 = inlined_call_operand.vmem [shape: f32[2,32], index: 1, kind: input, shape index: {}]   ;;  %s676_s2 = inlined_call_operand.vmem [shape: f32[2,5,32], index: 2, kind: input, shape index: {}]   ;;  %s677_s3 = inlined_call_operand.hbm [shape: f32[1,8,128], index: 3, kind: output, shape index: {}]  }
   0x1   :  { %v33_v2 = vunpack.c.l.s4 %v458_v1  ;;  %v15_v3 = vld [vmem:[%s674_s0] sm:$0xff] }
   0x2   :  { %v484_v4 = vshrl.u32 %v35_v0, 7  ;;  %v31_v6 = vcombine.high %v15_v3, %v15_v3 }
   0x3   :  { %v34_v5 = vunpack.c.0.s8 %v33_v2 }
   0x4   :  { %8 = vsyncpa [#allocation3], 0  ;;  %v82_v9 = vsub.s32 0, %v484_v4  ;;  %v17_v15 = vld [vmem:[%s676_s2] sm:$0x1f]  ;;  %vm128_vm0 = vcmask 258048  }
   0x5   :  { %v37_v7 = vsub.s32 %v34_v5, %v484_v4  ;;  %v19_v20 = vld [vmem:[%s676_s2 + $0x10] sm:$0x1f]  ;;  %v18_v21 = vld [vmem:[%s676_s2 + $0x8] sm:$0x1f]  ;;  %v21_v29 = vld [vmem:[%s676_s2 + $0x20] sm:$0x1f] }
   0x6   :  { %v22_v22 = vld [vmem:[%s676_s2 + $0x28] sm:$0x1f]  ;;  %v20_v36 = vld [vmem:[%s676_s2 + $0x18] sm:$0x1f]  ;;  %v23_v42 = vld [vmem:[%s676_s2 + $0x30] sm:$0x1f] }
   0x7   :  { %v38_v8 = vrot.slane %v15_v3, %v37_v7  ;;  %v45_v10 = vrot.slane %v31_v6, %v37_v7  ;;  %v24_v46 = vld [vmem:[%s676_s2 + $0x38] sm:$0x1f]  ;;  %v16_v49 = vld [vmem:[%s675_s1] sm:$0xff]  ;;  %vm26_vm1 = vcmask 261120   ;;  %vm338_vm4 = vcmask 1041409   ;;  %s459_s1 = smov [#allocation2]  }
   0x8   :  { %v25_v53 = vmul.f32 %v16_v49, %v15_v3  ;;  %vm340_vm6 = vcmask 1042434   ;;  %vm342_vm7 = vcmask 1043459   ;;  %vm344_vm13 = vcmask 1044484   ;;  %s385_s2 = sshll.u32 %s459_s1, 4  ;;  %s386_s2 = int_to_ptr.vmem [resolvable:$true] %s385_s2 }
   0x9   :  { %v54_v11 = vrot.slane %v38_v8, %v37_v7  ;;  %v46_v12 = vcombine.high %v38_v8, %v38_v8  ;;  %v47_v13 = vcombine.high %v45_v10, %v45_v10  ;;  %v61_v14 = vrot.slane %v45_v10, %v37_v7  ;;  %s434_s5 = scalar_lea.vmem %s386_s2, 128  ;;  %p439_p1 = scmp.lt.s32.totalorder %s386_s2, %s386_s2 }
   0xa   :  { %v27_v55 = vsel %vm26_vm1, %v25_v53, 0.0  ;;  %vm346_vm14 = vcmask 1045509   ;;  %vm348_vm15 = vcmask 1046534   ;;  %vm353_vm1 = vcmask 39936   ;;  %p435_p0 = scmp.ne.s32.totalorder %s386_s2, %s434_s5  ;;  %p440_p2 = scmp.lt.s32.totalorder %s434_s5, %s434_s5 }
   0xb   :  { %v83_v16 = vrot.slane %v54_v11, %v82_v9  ;;  %v76_v17 = vcombine.high %v54_v11, %v54_v11  ;;  %v68_v18 = vrot.slane %v46_v12, %v37_v7  ;;  %v75_v19 = vrot.slane %v47_v13, %v37_v7 }
   0xc   :  { %v99_v23 = vrot.slane %v61_v14, %v82_v9  ;;  %v77_v24 = vcombine.high %v61_v14, %v61_v14  ;;  %p441_p3 = por %p440_p2, %p439_p1 }
   0xd   :  { %v120_v25 = vmul.f32 %v83_v16, %v17_v15  ;;  %v91_v26 = vrot.slane %v76_v17, %v82_v9  ;;  %v87_v27 = vrot.slane %v68_v18, %v82_v9  ;;  %v103_v28 = vrot.slane %v75_v19, %v82_v9 }
   0xe   :  { %v78_v30 = vcombine.high %v68_v18, %v68_v18  ;;  %v79_v31 = vcombine.high %v75_v19, %v75_v19  ;;  %v124_v40 = vmul.f32 %v99_v23, %v21_v29  ;;  %v107_v41 = vrot.slane %v77_v24, %v82_v9  ;;  %p442_p4 = pnand %p441_p3, %p435_p0 }
   0xf   :  { %v129_v32 = vsel %vm128_vm0, %v120_v25, 0.0  ;;  %v122_v33 = vmul.f32 %v91_v26, %v19_v20  ;;  %v121_v34 = vmul.f32 %v87_v27, %v18_v21  ;;  %v125_v35 = vmul.f32 %v103_v28, %v22_v22 }
  0x10   :  { %130 = vadd.xlane.f32.xlu0 %v129_v32  ;;  %v95_v37 = vrot.slane %v78_v30, %v82_v9  ;;  %v111_v45 = vrot.slane %v79_v31, %v82_v9  ;;  %v141_v47 = vsel %vm128_vm0, %v124_v40, 0.0  ;;  %v126_v48 = vmul.f32 %v107_v41, %v23_v42 }
  0x11   :  { %v135_v38 = vsel %vm128_vm0, %v122_v33, 0.0  ;;  %v132_v39 = vsel %vm128_vm0, %v121_v34, 0.0  ;;  %v144_v43 = vsel %vm128_vm0, %v125_v35, 0.0 }
  0x12   :  { %136 = vadd.xlane.f32.xlu1 %v135_v38  ;;  %v123_v44 = vmul.f32 %v95_v37, %v20_v36  ;;  %v127_v51 = vmul.f32 %v111_v45, %v24_v46  ;;  %v147_v52 = vsel %vm128_vm0, %v126_v48, 0.0 }
  0x14   :  { %133 = vadd.xlane.f32.xlu0 %v132_v39  ;;  %v138_v50 = vsel %vm128_vm0, %v123_v44, 0.0  ;;  %v150_v54 = vsel %vm128_vm0, %v127_v51, 0.0  ;;  %v305_v39 = vand.u32 127, %v35_v0  ;;  %vm350_vm0 = vcmask 1047559  }
  0x16   :  { %145 = vadd.xlane.f32.xlu1 %v144_v43  ;;  %v566_v45 = vsub.s32 %v305_v39, %v484_v4 }
  0x18   :  { %142 = vadd.xlane.f32.xlu0 %v141_v47 }
  0x1a   :  { %139 = vadd.xlane.f32.xlu1 %v138_v50 }
  0x1c   :  { %148 = vadd.xlane.f32.xlu0 %v147_v52 }
  0x1e   :  { %151 = vadd.xlane.f32.xlu1 %v150_v54 }
  0x20   :  { %28 = vadd.xlane.f32.xlu0 %v27_v55 }
  0x9d   :  { %v523_v56 = vpop.xlane.xlu0 %130 }
  0x9e   :  { %v168_v57 = vsub.f32 0.0, %v523_v56 }
  0x9f   :  { %v526_v58 = vpop.xlane.xlu1 %136 }
  0xa0   :  { %v184_v59 = vand.u32 2147483647, %v168_v57  ;;  %v170_v60 = vsub.f32 0.0, %v526_v58  ;;  %v176_v48 = vmin.f32 %v168_v57, 0.0 }
  0xa1   :  { %v531_v61 = vpop.xlane.xlu0 %133 }
  0xa2   :  { %v192_v62 = vsub.f32 0.0, %v184_v59  ;;  %v186_v63 = vand.u32 2147483647, %v170_v60  ;;  %v169_v1 = vsub.f32 0.0, %v531_v61  ;;  %v571_v0 = vmin.f32 %v170_v60, 0.0 }
  0xa3   :  { %v534_v2 = vpop.xlane.xlu1 %145 }
  0xa4   :  { %v200_v3 = vmul.f32 1.442695, %v192_v62  ;;  %v194_v5 = vsub.f32 0.0, %v186_v63  ;;  %v185_v6 = vand.u32 2147483647, %v169_v1  ;;  %v173_v7 = vsub.f32 0.0, %v534_v2 }
  0xa5   :  { %v539_v8 = vpop.xlane.xlu0 %142  ;;  %v177_v53 = vmin.f32 %v169_v1, 0.0 }
  0xa6   :  { %398 = vpow2.f32 %v200_v3  ;;  %v204_v9 = vmul.f32 1.442695, %v194_v5  ;;  %v193_v10 = vsub.f32 0.0, %v185_v6  ;;  %v172_v11 = vsub.f32 0.0, %v539_v8 }
  0xa7   :  { %v189_v12 = vand.u32 2147483647, %v173_v7  ;;  %v544_v13 = vpop.xlane.xlu1 %139  ;;  %v584_v63 = vmin.f32 %v173_v7, 0.0 }
  0xa8   :  { %400 = vpow2.f32 %v204_v9  ;;  %v202_v14 = vmul.f32 1.442695, %v193_v10  ;;  %v188_v15 = vand.u32 2147483647, %v172_v11  ;;  %v171_v17 = vsub.f32 0.0, %v544_v13 }
  0xa9   :  { %v197_v16 = vsub.f32 0.0, %v189_v12  ;;  %v549_v18 = vpop.xlane.xlu0 %148  ;;  %v180_v5 = vmin.f32 %v172_v11, 0.0 }
  0xaa   :  { %402 = vpow2.f32 %v202_v14  ;;  %v196_v19 = vsub.f32 0.0, %v188_v15  ;;  %v174_v20 = vsub.f32 0.0, %v549_v18  ;;  %v187_v22 = vand.u32 2147483647, %v171_v17 }
  0xab   :  { %v210_v21 = vmul.f32 1.442695, %v197_v16  ;;  %v552_v23 = vpop.xlane.xlu1 %151  ;;  %v591_v6 = vmin.f32 %v171_v17, 0.0 }
  0xac   :  { %v208_v24 = vmul.f32 1.442695, %v196_v19  ;;  %v190_v25 = vand.u32 2147483647, %v174_v20  ;;  %v175_v26 = vsub.f32 0.0, %v552_v23  ;;  %v195_v27 = vsub.f32 0.0, %v187_v22 }
  0xad   :  { %404 = vpow2.f32 %v210_v21 }
  0xae   :  { %406 = vpow2.f32 %v208_v24  ;;  %v198_v28 = vsub.f32 0.0, %v190_v25  ;;  %v191_v29 = vand.u32 2147483647, %v175_v26  ;;  %v206_v30 = vmul.f32 1.442695, %v195_v27 }
  0xb0   :  { %v399_v31 = vpop.eup %398  ;;  %v212_v32 = vmul.f32 1.442695, %v198_v28  ;;  %v199_v33 = vsub.f32 0.0, %v191_v29  ;;  %408 = vpow2.f32 %v206_v30 }
  0xb1   :  { %v216_v34 = vadd.f32 1.0, %v399_v31  ;;  %v219_v42 = vmul.f32 -0.5, %v399_v31  ;;  %v222_v52 = vand.u32 2147483647, %v399_v31 }
  0xb2   :  { %v401_v35 = vpop.eup %400  ;;  %410 = vpow2.f32 %v212_v32  ;;  %v214_v36 = vmul.f32 1.442695, %v199_v33 }
  0xb3   :  { %412 = vlog2.f32 %v216_v34  ;;  %v234_v37 = vadd.f32 1.0, %v401_v35  ;;  %v237_v46 = vmul.f32 -0.5, %v401_v35  ;;  %v220_v51 = vadd.f32 1.0, %v219_v42 }
  0xb4   :  { %v403_v38 = vpop.eup %402  ;;  %414 = vpow2.f32 %v214_v36  ;;  %v240_v55 = vand.u32 2147483647, %v401_v35  ;;  %vm593_vm2 = vcmp.lt.f32.partialorder %v222_v52, 0.0004427343 }
  0xb5   :  { %416 = vlog2.f32 %v234_v37  ;;  %v225_v40 = vadd.f32 1.0, %v403_v38  ;;  %v228_v49 = vmul.f32 -0.5, %v403_v38  ;;  %v238_v60 = vadd.f32 1.0, %v237_v46 }
  0xb6   :  { %v231_v62 = vand.u32 2147483647, %v403_v38  ;;  %v221_v7 = vmul.f32 %v399_v31, %v220_v51  ;;  %vm598_vm3 = vcmp.lt.f32.partialorder %v240_v55, 0.0004427343 }
  0xb7   :  { %v560_v41 = vpop.eup %404  ;;  %418 = vlog2.f32 %v225_v40  ;;  %v229_v3 = vadd.f32 1.0, %v228_v49  ;;  %v239_v15 = vmul.f32 %v401_v35, %v238_v60 }
  0xb8   :  { %v562_v43 = vpop.eup %406  ;;  %v261_v44 = vadd.f32 1.0, %v560_v41  ;;  %v264_v58 = vmul.f32 -0.5, %v560_v41  ;;  %vm602_vm5 = vcmp.lt.f32.partialorder %v231_v62, 0.0004427343  ;;  %v267_v27 = vand.u32 2147483647, %v560_v41 }
  0xb9   :  { %v252_v47 = vadd.f32 1.0, %v562_v43  ;;  %v255_v56 = vmul.f32 -0.5, %v562_v43  ;;  %v230_v22 = vmul.f32 %v403_v38, %v229_v3  ;;  %v258_v28 = vand.u32 2147483647, %v562_v43 }
  0xba   :  { %420 = vlog2.f32 %v261_v44  ;;  %v573_v50 = vpop.eup %408  ;;  %v265_v14 = vadd.f32 1.0, %v264_v58  ;;  %vm621_vm8 = vcmp.lt.f32.partialorder %v267_v27, 0.0004427343 }
  0xbb   :  { %422 = vlog2.f32 %v252_v47  ;;  %v243_v57 = vadd.f32 1.0, %v573_v50  ;;  %v256_v8 = vadd.f32 1.0, %v255_v56  ;;  %v246_v17 = vmul.f32 -0.5, %v573_v50 }
  0xbc   :  { %v577_v54 = vpop.eup %410  ;;  %v266_v32 = vmul.f32 %v560_v41, %v265_v14  ;;  %v249_v34 = vand.u32 2147483647, %v573_v50  ;;  %vm625_vm9 = vcmp.lt.f32.partialorder %v258_v28, 0.0004427343  ;;  %v182_v47 = vmin.f32 %v174_v20, 0.0 }
  0xbd   :  { %v413_v59 = vpop.eup %412  ;;  %v270_v61 = vadd.f32 1.0, %v577_v54  ;;  %424 = vlog2.f32 %v243_v57  ;;  %v273_v24 = vmul.f32 -0.5, %v577_v54  ;;  %v257_v33 = vmul.f32 %v562_v43, %v256_v8 }
  0xbe   :  { %v587_v1 = vpop.eup %414  ;;  %v218_v10 = vmul.f32 0.6931472, %v413_v59  ;;  %v247_v38 = vadd.f32 1.0, %v246_v17  ;;  %v276_v39 = vand.u32 2147483647, %v577_v54 }
  0xbf   :  { %v417_v9 = vpop.eup %416  ;;  %426 = vlog2.f32 %v270_v61  ;;  %v279_v2 = vadd.f32 1.0, %v587_v1  ;;  %v282_v29 = vmul.f32 -0.5, %v587_v1  ;;  %v274_v46 = vadd.f32 1.0, %v273_v24  ;;  %v29_v24 = vpop.xlane.xlu0 %28 }
  0xc0   :  { %v236_v19 = vmul.f32 0.6931472, %v417_v9  ;;  %v224_v25 = vsel %vm593_vm2, %v221_v7, %v218_v10  ;;  %vm636_vm10 = vcmp.lt.f32.partialorder %v249_v34, 0.0004427343  ;;  %v248_v18 = vmul.f32 %v573_v50, %v247_v38 }
  0xc1   :  { %v419_v11 = vpop.eup %418  ;;  %428 = vlog2.f32 %v279_v2  ;;  %v288_v40 = vsub.f32 %v176_v48, %v224_v25  ;;  %v283_v49 = vadd.f32 1.0, %v282_v29  ;;  %v285_v20 = vand.u32 2147483647, %v587_v1 }
  0xc2   :  { %v227_v21 = vmul.f32 0.6931472, %v419_v11  ;;  %v242_v42 = vsel %vm598_vm3, %v239_v15, %v236_v19  ;;  %v275_v62 = vmul.f32 %v577_v54, %v274_v46  ;;  %vm277_vm11 = vcmp.lt.f32.partialorder %v276_v39, 0.0004427343 }
  0xc3   :  { %v290_v56 = vsub.f32 %v571_v0, %v242_v42  ;;  %v309_v59 = vrot.slane %v288_v40, %v566_v45  ;;  %v284_v0 = vmul.f32 %v587_v1, %v283_v49  ;;  %v183_v54 = vmin.f32 %v175_v26, 0.0 }
  0xc4   :  { %v421_v30 = vpop.eup %420  ;;  %v233_v31 = vsel %vm602_vm5, %v230_v22, %v227_v21  ;;  %vm286_vm12 = vcmp.lt.f32.partialorder %v285_v20, 0.0004427343  ;;  %v154_v25 = vand.u32 2147483647, %v29_v24  ;;  %vm363_vm3 = vcmp.lt.s32.totalorder %v484_v4, 2 }
  0xc5   :  { %v423_v35 = vpop.eup %422  ;;  %v289_v36 = vsub.f32 %v177_v53, %v233_v31  ;;  %v263_v37 = vmul.f32 0.6931472, %v421_v30  ;;  %v317_v13 = vrot.slane %v290_v56, %v566_v45 }
  0xc6   :  { %v254_v44 = vmul.f32 0.6931472, %v423_v35  ;;  %v155_v27 = vsub.f32 0.0, %v154_v25 }
  0xc7   :  { %v425_v51 = vpop.eup %424  ;;  %v313_v48 = vrot.slane %v289_v36, %v566_v45  ;;  %v269_v52 = vsel %vm621_vm8, %v266_v32, %v263_v37  ;;  %v153_v36 = vmin.f32 %v29_v24, 0.0 }
  0xc8   :  { %v260_v53 = vsel %vm625_vm9, %v257_v33, %v254_v44  ;;  %v245_v57 = vmul.f32 0.6931472, %v425_v51  ;;  %v293_v3 = vsub.f32 %v584_v63, %v269_v52  ;;  %v156_v28 = vmul.f32 1.442695, %v155_v27 }
  0xc9   :  { %v427_v58 = vpop.eup %426  ;;  %v292_v9 = vsub.f32 %v180_v5, %v260_v53  ;;  %v339_v12 = vsel %vm338_vm4, %v313_v48, %v309_v59  ;;  %vm365_vm4 = vcmask 7168  }
  0xca   :  { %v272_v60 = vmul.f32 0.6931472, %v427_v58  ;;  %v251_v10 = vsel %vm636_vm10, %v248_v18, %v245_v57  ;;  %v329_v15 = vrot.slane %v293_v3, %v566_v45  ;;  %430 = vpow2.f32 %v156_v28 }
  0xcb   :  { %v429_v61 = vpop.eup %428  ;;  %v291_v50 = vsub.f32 %v591_v6, %v251_v10  ;;  %v325_v1 = vrot.slane %v292_v9, %v566_v45  ;;  %v341_v6 = vsel %vm340_vm6, %v317_v13, %v339_v12 }
  0xcc   :  { %v278_v2 = vsel %vm277_vm11, %v275_v62, %v272_v60  ;;  %v281_v7 = vmul.f32 0.6931472, %v429_v61 }
  0xcd   :  { %v294_v14 = vsub.f32 %v182_v47, %v278_v2  ;;  %v321_v63 = vrot.slane %v291_v50, %v566_v45 }
  0xce   :  { %v287_v5 = vsel %vm286_vm12, %v284_v0, %v281_v7 }
  0xcf   :  { %v333_v8 = vrot.slane %v294_v14, %v566_v45  ;;  %v295_v11 = vsub.f32 %v183_v54, %v287_v5  ;;  %v343_v16 = vsel %vm342_vm7, %v321_v63, %v341_v6 }
  0xd0   :  { %v345_v26 = vsel %vm344_vm13, %v325_v1, %v343_v16 }
  0xd1   :  { %v337_v23 = vrot.slane %v295_v11, %v566_v45  ;;  %v347_v17 = vsel %vm346_vm14, %v329_v15, %v345_v26 }
  0xd2   :  { %v349_v19 = vsel %vm348_vm15, %v333_v8, %v347_v17 }
  0xd3   :  { %v351_v21 = vsel %vm350_vm0, %v337_v23, %v349_v19 }
  0xd4   :  { %v354_v22 = vsel %vm353_vm1, %v351_v21, 0.0  ;;  %v431_v29 = vpop.eup %430 }
  0xd5   :  { %355 = vadd.xlane.f32.xlu1 %v354_v22  ;;  %v158_v30 = vadd.f32 1.0, %v431_v29  ;;  %v161_v31 = vmul.f32 -0.5, %v431_v29  ;;  %v164_v45 = vand.u32 2147483647, %v431_v29 }
  0xd7   :  { %432 = vlog2.f32 %v158_v30  ;;  %v162_v32 = vadd.f32 1.0, %v161_v31  ;;  %vm165_vm2 = vcmp.lt.f32.partialorder %v164_v45, 0.0004427343 }
  0xd9   :  { %v163_v35 = vmul.f32 %v431_v29, %v162_v32 }
  0xe1   :  { %v433_v33 = vpop.eup %432 }
  0xe2   :  { %v160_v34 = vmul.f32 0.6931472, %v433_v33 }
  0xe4   :  { %v166_v37 = vsel %vm165_vm2, %v163_v35, %v160_v34 }
  0xe5   :  { %v167_v38 = vsub.f32 %v153_v36, %v166_v37 }
 0x162   :  { %v356_v39 = vpop.xlane.xlu1 %355 }
 0x163   :  { %v357_v40 = vadd.f32 %v356_v39, %v167_v38 }
 0x165   :  { %v364_v42 = vsel %vm363_vm3, %v357_v40, 0.0 }
 0x166   :  { %v366_v44 = vsel %vm365_vm4, %v364_v42, 0.0 }
 0x167   :  { %367 = vadd.xlane.f32.xlu0 %v366_v44 }
 0x1f4   :  { %v368_v46 = vpop.xlane.xlu0 %367 }
 0x1f5   :  { %v369_v41 = vrot.slane %v368_v46, 4 }
 0x1f7   :  { %v370_v43 = vadd.f32 %v369_v41, %v368_v46 }
 0x1f9   :  { %v371_v47 = vrot.slane %v370_v43, 2 }
 0x1fb   :  { %v372_v49 = vadd.f32 %v371_v47, %v370_v43 }
 0x1fd   :  { %v373_v51 = vrot.slane %v372_v49, 1 }
 0x1ff   :  { %v374_v48 = vadd.f32 %v373_v51, %v372_v49 }
 0x201   :  { %393 = vpush %v374_v48 }
 0x232   :  { %s394_s4 = spop %393 }
 0x233   :  { %v376_v52 = vstv %s394_s4 }
 0x234   :  { %378 = vst [vmem:[#allocation2] sm:$0xff] %v376_v52 }
 0x235   :  { %445 = shalt.err (!%p442_p4)
}
 0x236   :  { %s446_s8 = scalar_lea.hbm %s677_s3, 128 }
 0x237   :  { %p447_p5 = scmp.ne.s32.totalorder %s677_s3, %s446_s8  ;;  %p450_p6 = scmp.lt.u32.totalorder %s446_s8, %s677_s3 }
 0x239   :  { %p452_p7 = pnand %p450_p6, %p447_p5 }
 0x23b   :  { %455 = shalt.err (!%p452_p7)
}
 0x23c   :  { %388 = dma.vmem_to_hbm [thread:$0]  %s386_s2, 128, %s677_s3, [#allocation3]  }
 0x23d   :  { %456 = dma.done.wait [#allocation3], 128  }
 0x23e   :  { %457 = vsyncadd [#allocation3], 4294967168 }
 0x23f   :  { %392 = vsyncpa [#allocation3], 1 }

</bundles_post_ra>
